<compile_context>
chip_gen: v7x
topology: tpu7x:2x2x1
jax: 0.10.0
libtpu: 0.0.40
codegen_flags: <defaults>
</compile_context>

<pallas_src>
import functools

import jax
import jax.numpy as jnp
from jax.experimental import pallas as pl
from jax.experimental.pallas import tpu as pltpu


def _round_up(x, m):
    return (x + m - 1) // m * m


# ------------------------------ Pallas kernel ------------------------------ #

def _sign_fused_kernel(inc_a_ref, proj_a_ref, sign_a_ref, *refs,
                       num_hops_p1, n_inc, n_proj):
    """Fused SIGN forward for one row tile.

    refs layout:
      feats[h]   : (TILE_N, d_in)      bf16 hop-h feature tile
      inc_w[l]   : (H, in_l, out_l)    stacked inception FFN weights (layer l)
      proj_w[0]  : (H, hidden, p1)     project layer-1 weight, per-hop slices
      proj_w[l>0]: (in_l, out_l)       remaining project layers (last one is
                                       zero-padded on its output axis)
      o_ref      : (TILE_N, out_pad)
    """
    feats = refs[:num_hops_p1]
    inc_w = refs[num_hops_p1:num_hops_p1 + n_inc]
    proj_w = refs[num_hops_p1 + n_inc:num_hops_p1 + n_inc + n_proj]
    o_ref = refs[num_hops_p1 + n_inc + n_proj]

    sign_a = sign_a_ref[0]
    proj_a = proj_a_ref[0]

    # NOTE: hops are unrolled in Python — fine for small H / hidden.  For
    # H >= 8 or hidden >= 256, move hops onto a trailing "arbitrary" grid axis
    # with a VMEM accumulator to bound live ranges / shrink per-step DMA.
    acc = None
    for h in range(num_hops_p1):
        a_h = inc_a_ref[h]
        z = feats[h][...]                                   # bf16 (TILE_N, d_in)
        # Inception FFN branch h: PReLU between layers, none after the last.
        for l in range(n_inc):
            z = jnp.dot(z, inc_w[l][h],                     # bf16 x bf16 -> f32
                        preferred_element_type=jnp.float32)
            if l < n_inc - 1:
                z = jnp.where(z >= 0, z, a_h * z).astype(inc_w[l + 1].dtype)
        # SIGN-level PReLU on the branch output; concat + project layer-1 is
        # expressed as accumulation against the hop's weight slice.
        z = jnp.where(z >= 0, z, sign_a * z).astype(proj_w[0].dtype)
        part = jnp.dot(z, proj_w[0][h], preferred_element_type=jnp.float32)
        acc = part if acc is None else acc + part

    # Remaining project layers (PReLU between layers, none after the last).
    y = acc
    for l in range(1, n_proj):
        y = jnp.where(y >= 0, y, proj_a * y).astype(proj_w[l].dtype)
        y = jnp.dot(y, proj_w[l][...], preferred_element_type=jnp.float32)

    o_ref[...] = y.astype(o_ref.dtype)
    # TODO(synk): nn.Dropout with p > 0 (training mode) not implemented;
    # p = 0.0 => identity, which matches the module defaults.


# -------------------------------- Wrapper ---------------------------------- #

def _tpu_vmem_capacity_bytes():
    try:
        info = pltpu.get_tpu_info()
        cap = getattr(info, "vmem_capacity_bytes", None)
        if cap:
            return int(cap)
    except Exception:
        pass
    return 64 * 2**20            # conservative fallback (v7x per-TC VMEM)


def sign_forward(params, feats, *, tile_n=None, out_dtype=jnp.float32):
    """SIGN.forward: fused inception branches + concat/PReLU + project FFN."""
    inc_ws = list(params["inc_ws"])      # [(H, in_l, out_l)] bf16
    proj_ws = list(params["proj_ws"])    # [(H, hidden, p1), (in_l, out_l), ...]
    H = inc_ws[0].shape[0]
    assert len(feats) == H
    n, d_in = feats[0].shape
    out_dim = proj_ws[-1].shape[-1]
    hidden = inc_ws[0].shape[-1]

    # bf16 at the HBM boundary (weights already stored bf16 by init_sign).
    cdt = inc_ws[0].dtype
    feats = [f if f.dtype == cdt else f.astype(cdt) for f in feats]

    # Lane-dense output: zero-pad the last project weight's output axis to a
    # multiple of 128 so output stores are unmasked; slice the pad off after.
    out_pad = _round_up(out_dim, 128)
    if out_pad != out_dim:
        pad = [(0, 0)] * (proj_ws[-1].ndim - 1) + [(0, out_pad - out_dim)]
        proj_ws[-1] = jnp.pad(proj_ws[-1], pad)

    # Per-generation tile / scoped-VMEM sizing.
    vmem_cap = _tpu_vmem_capacity_bytes()
    big_vmem = vmem_cap >= 96 * 2**20        # v5e / v6e (128 MiB physical)
    if tile_n is None:
        tile_n = 2048 if big_vmem else 1024  # v7x (64 MiB) keeps tiles <= 1024
    if n <= tile_n:
        tile_n = n                           # single full-extent row block
    else:
        tile_n = _round_up(tile_n, 16)       # bf16 packs 2 rows per sublane
    grid = (pl.cdiv(n, tile_n),)             # no jnp.pad: trailing partial
                                             # block is row-independent compute.

    def full_block(w):
        # Whole-array block, constant index_map -> stays VMEM-resident.
        # NOTE: still double-buffered by default; on v7x with large hidden,
        # single-buffer these (pipeline_mode=pl.Buffered(1)) or stage once
        # into VMEM scratch to halve resident-weight VMEM.
        return pl.BlockSpec(w.shape, lambda i, nd=w.ndim: (0,) * nd)

    in_specs = (
        [pl.BlockSpec(memory_space=pltpu.MemorySpace.SMEM)] * 3   # PReLU slopes
        + [pl.BlockSpec((tile_n, d_in), lambda i: (i, 0))] * H    # hop tiles
        + [full_block(w) for w in inc_ws]
        + [full_block(w) for w in proj_ws]
    )
    out_specs = pl.BlockSpec((tile_n, out_pad), lambda i: (i, 0))

    all_ws = inc_ws + proj_ws
    w_bytes = sum(int(w.size) * w.dtype.itemsize for w in all_ws)
    f_itemsize = jnp.dtype(cdt).itemsize
    o_itemsize = jnp.dtype(out_dtype).itemsize
    flops = 2 * n * sum(int(w.size) for w in all_ws)
    bytes_accessed = (H * n * d_in * f_itemsize + w_bytes
                      + n * out_pad * o_itemsize)

    # VMEM: 2x-buffered resident weights + 2x feature / output tiles +
    # in-flight f32 activations; cap at ~75% of this generation's VMEM
    # (=> ~48 MiB on v7x, ~96 MiB on v5e/v6e).
    vmem_needed = (
        2 * w_bytes
        + 2 * H * tile_n * d_in * f_itemsize
        + 2 * tile_n * out_pad * o_itemsize
        + 4 * tile_n * max(hidden, d_in, out_pad) * 4
    )
    vmem_limit = int(min(max(2 * vmem_needed, 32 * 2**20),
                         int(0.75 * vmem_cap)))

    kernel = functools.partial(
        _sign_fused_kernel,
        num_hops_p1=H, n_inc=len(inc_ws), n_proj=len(proj_ws))

    out = pl.pallas_call(
        kernel,
        out_shape=jax.ShapeDtypeStruct((n, out_pad), out_dtype),
        grid=grid,
        in_specs=in_specs,
        out_specs=out_specs,
        compiler_params=pltpu.CompilerParams(
            dimension_semantics=("parallel",),
            vmem_limit_bytes=vmem_limit),
        cost_estimate=pl.CostEstimate(
            flops=flops, transcendentals=0, bytes_accessed=bytes_accessed),
    )(params["inc_alpha"], params["proj_alpha"], params["sign_alpha"],
      *feats, *inc_ws, *proj_ws)

    # NOTE: for deployment sizes, also consider padding d_in / hidden toward
    # 128 (or stacking hop slices along K) to improve MXU K/N utilization.
    return out[:, :out_dim] if out_pad != out_dim else out


# ---------------------------- Parameter creation --------------------------- #

def _uniform(key, shape, bound):
    return jax.random.uniform(key, shape, jnp.float32, -bound, bound)


def _ffn_layer_dims(in_dim, hidden_dim, out_dim, num_layers):
    if num_layers == 1:
        return [(in_dim, out_dim)]
    dims = [(in_dim, hidden_dim)]
    dims += [(hidden_dim, hidden_dim)] * (num_layers - 2)
    dims.append((hidden_dim, out_dim))
    return dims


def init_sign(key, in_dim, hidden_dim, out_dim, num_hops, num_layers,
              dtype=jnp.bfloat16):
    """Weights stored pre-transposed (in, out), stacked across hops, in the
    kernel compute dtype (bf16 by default -> half the weight HBM/DMA bytes)."""
    H = num_hops + 1
    k_inc, k_proj = jax.random.split(key)

    # Inception branches: identical shapes -> stacked (H, in_l, out_l).
    inc_dims = _ffn_layer_dims(in_dim, hidden_dim, hidden_dim, num_layers)
    inc_keys = jax.random.split(k_inc, len(inc_dims))
    inc_ws = []
    for k, (di, do) in zip(inc_keys, inc_dims):
        bound = 1.0 / (di ** 0.5)                 # torch nn.Linear default init
        inc_ws.append(_uniform(k, (H, di, do), bound).astype(dtype))

    # Project FFN: layer-1 stored as per-hop slices (H, hidden, p1) so the
    # torch `cat` can be fused as an accumulation inside the kernel.
    proj_dims = _ffn_layer_dims(H * hidden_dim, hidden_dim, out_dim, num_layers)
    proj_keys = jax.random.split(k_proj, len(proj_dims))
    proj_ws = []
    for idx, (k, (di, do)) in enumerate(zip(proj_keys, proj_dims)):
        bound = 1.0 / (di ** 0.5)
        w = _uniform(k, (di, do), bound)
        if idx == 0:
            w = w.reshape(H, hidden_dim, do)
        proj_ws.append(w.astype(dtype))

    return {
        "inc_ws": inc_ws,
        "inc_alpha": jnp.full((H,), 0.25, jnp.float32),   # per-branch nn.PReLU()
        "proj_ws": proj_ws,
        "proj_alpha": jnp.full((1,), 0.25, jnp.float32),
        "sign_alpha": jnp.full((1,), 0.25, jnp.float32),
    }


# ---------------------------- Pure-JAX reference --------------------------- #

def _prelu(x, a):
    return jnp.where(x >= 0, x, a * x)


def _sign_ref(params, feats):
    """Reference that mirrors the kernel's precision policy: bf16 MXU inputs,
    f32 accumulation, bf16 re-quantization between layers."""
    inc_ws, proj_ws = params["inc_ws"], params["proj_ws"]
    cdt = inc_ws[0].dtype
    H = inc_ws[0].shape[0]
    parts = []
    for h in range(H):
        x = feats[h].astype(cdt)
        for l, w in enumerate(inc_ws):
            x = jnp.dot(x, w[h], preferred_element_type=jnp.float32)
            if l < len(inc_ws) - 1:
                x = _prelu(x, params["inc_alpha"][h]).astype(cdt)
        parts.append(x)
    y = jnp.concatenate(parts, axis=-1)
    y = _prelu(y, params["sign_alpha"][0]).astype(cdt)
    y = jnp.dot(y, proj_ws[0].reshape(-1, proj_ws[0].shape[-1]),
                preferred_element_type=jnp.float32)
    for l in range(1, len(proj_ws)):
        y = _prelu(y, params["proj_alpha"][0]).astype(cdt)
        y = jnp.dot(y, proj_ws[l], preferred_element_type=jnp.float32)
    return y


# ----------------------------------- Main ----------------------------------- #

if __name__ == "__main__":
    in_dim, hidden_dim, out_dim = 16, 32, 8
    num_hops, num_layers = 2, 2   # feats has num_hops + 1 = 3 entries

    key = jax.random.PRNGKey(0)
    param_key, feat_key = jax.random.split(key)
    params = init_sign(param_key, in_dim, hidden_dim, out_dim,
                       num_hops, num_layers)

    # Two paths: tiny single-block N, and a multi-tile N whose trailing block
    # is partial (exercises the pad-free pl.cdiv grid).
    for N, tile in ((8, None), (1000, 256)):
        fkeys = jax.random.split(jax.random.fold_in(feat_key, N), num_hops + 1)
        feats = [jax.random.normal(k, (N, in_dim), jnp.float32) for k in fkeys]

        out = jax.block_until_ready(sign_forward(params, feats, tile_n=tile))
        ref = _sign_ref(params, feats)

        assert out.shape == (N, out_dim), out.shape
        err = float(jnp.max(jnp.abs(out - ref)))
        assert jnp.allclose(out, ref, atol=2e-2, rtol=2e-2), err

    print("KERNEL_OK")
</pallas_src>

<mosaic_0001>
module attributes {stable_mosaic.version = 11 : i64} {
  func.func @_sign_fused_kernel(%arg0: i32, %arg1: memref<3xf32, #tpu.memory_space<smem>>, %arg2: memref<1xf32, #tpu.memory_space<smem>>, %arg3: memref<1xf32, #tpu.memory_space<smem>>, %arg4: memref<8x16xbf16, #tpu.memory_space<vmem>>, %arg5: memref<8x16xbf16, #tpu.memory_space<vmem>>, %arg6: memref<8x16xbf16, #tpu.memory_space<vmem>>, %arg7: memref<3x16x32xbf16, #tpu.memory_space<vmem>>, %arg8: memref<3x32x32xbf16, #tpu.memory_space<vmem>>, %arg9: memref<3x32x32xbf16, #tpu.memory_space<vmem>>, %arg10: memref<32x128xbf16, #tpu.memory_space<vmem>>, %arg11: memref<8x128xf32, #tpu.memory_space<vmem>>) attributes {dimension_semantics = [#tpu.dimension_semantics<parallel>], iteration_bounds = array<i64: 1>, scalar_prefetch = 0 : i64, scratch_operands = 0 : i64, tpu.core_type = #tpu.core_type<tc>, window_params = [{transform_indices = @transform_0, window_bounds = array<i64: 3>}, {transform_indices = @transform_1, window_bounds = array<i64: 1>}, {transform_indices = @transform_2, window_bounds = array<i64: 1>}, {transform_indices = @transform_3, window_bounds = array<i64: 8, 16>}, {transform_indices = @transform_4, window_bounds = array<i64: 8, 16>}, {transform_indices = @transform_5, window_bounds = array<i64: 8, 16>}, {pipeline_mode = #tpu.pipeline_mode<synchronous>, transform_indices = @transform_6, window_bounds = array<i64: 3, 16, 32>}, {pipeline_mode = #tpu.pipeline_mode<synchronous>, transform_indices = @transform_7, window_bounds = array<i64: 3, 32, 32>}, {pipeline_mode = #tpu.pipeline_mode<synchronous>, transform_indices = @transform_8, window_bounds = array<i64: 3, 32, 32>}, {pipeline_mode = #tpu.pipeline_mode<synchronous>, transform_indices = @transform_9, window_bounds = array<i64: 32, 128>}, {transform_indices = @transform_10, window_bounds = array<i64: 8, 128>}]} {
    %c0 = arith.constant 0 : index
    %0 = memref.load %arg3[%c0] : memref<1xf32, #tpu.memory_space<smem>>
    %c0_0 = arith.constant 0 : index
    %1 = memref.load %arg2[%c0_0] : memref<1xf32, #tpu.memory_space<smem>>
    %c0_1 = arith.constant 0 : index
    %2 = memref.load %arg1[%c0_1] : memref<3xf32, #tpu.memory_space<smem>>
    %c0_2 = arith.constant 0 : index
    %c0_3 = arith.constant 0 : index
    %3 = vector.load %arg4[%c0_2, %c0_3] : memref<8x16xbf16, #tpu.memory_space<vmem>>, vector<8x16xbf16>
    %c0_4 = arith.constant 0 : index
    %c0_5 = arith.constant 0 : index
    %c0_6 = arith.constant 0 : index
    %4 = vector.load %arg7[%c0_4, %c0_5, %c0_6] : memref<3x16x32xbf16, #tpu.memory_space<vmem>>, vector<1x16x32xbf16>
    %5 = vector.shape_cast %4 : vector<1x16x32xbf16> to vector<16x32xbf16>
    %cst = arith.constant dense<0.000000e+00> : vector<8x32xf32>
    %6 = tpu.matmul %3, %5, %cst {dimension_numbers = #tpu.dot_dimension_numbers<[1], [0], [0], [1], [0, 0, 1, 1], [], []>} : vector<8x16xbf16>, vector<16x32xbf16>, vector<8x32xf32> -> vector<8x32xf32>
    %cst_7 = arith.constant 0.000000e+00 : f32
    %7 = vector.broadcast %cst_7 : f32 to vector<8x32xf32>
    %8 = arith.cmpf oge, %6, %7 : vector<8x32xf32>
    %9 = vector.broadcast %2 : f32 to vector<8x32xf32>
    %10 = arith.mulf %9, %6 : vector<8x32xf32>
    %11 = arith.select %8, %6, %10 : vector<8x32xi1>, vector<8x32xf32>
    %12 = arith.truncf %11 : vector<8x32xf32> to vector<8x32xbf16>
    %c0_8 = arith.constant 0 : index
    %c0_9 = arith.constant 0 : index
    %c0_10 = arith.constant 0 : index
    %13 = vector.load %arg8[%c0_8, %c0_9, %c0_10] : memref<3x32x32xbf16, #tpu.memory_space<vmem>>, vector<1x32x32xbf16>
    %14 = vector.shape_cast %13 : vector<1x32x32xbf16> to vector<32x32xbf16>
    %cst_11 = arith.constant dense<0.000000e+00> : vector<8x32xf32>
    %15 = tpu.matmul %12, %14, %cst_11 {dimension_numbers = #tpu.dot_dimension_numbers<[1], [0], [0], [1], [0, 0, 1, 1], [], []>} : vector<8x32xbf16>, vector<32x32xbf16>, vector<8x32xf32> -> vector<8x32xf32>
    %cst_12 = arith.constant 0.000000e+00 : f32
    %16 = vector.broadcast %cst_12 : f32 to vector<8x32xf32>
    %17 = arith.cmpf oge, %15, %16 : vector<8x32xf32>
    %18 = vector.broadcast %0 : f32 to vector<8x32xf32>
    %19 = arith.mulf %18, %15 : vector<8x32xf32>
    %20 = arith.select %17, %15, %19 : vector<8x32xi1>, vector<8x32xf32>
    %21 = arith.truncf %20 : vector<8x32xf32> to vector<8x32xbf16>
    %c0_13 = arith.constant 0 : index
    %c0_14 = arith.constant 0 : index
    %c0_15 = arith.constant 0 : index
    %22 = vector.load %arg9[%c0_13, %c0_14, %c0_15] : memref<3x32x32xbf16, #tpu.memory_space<vmem>>, vector<1x32x32xbf16>
    %23 = vector.shape_cast %22 : vector<1x32x32xbf16> to vector<32x32xbf16>
    %cst_16 = arith.constant dense<0.000000e+00> : vector<8x32xf32>
    %24 = tpu.matmul %21, %23, %cst_16 {dimension_numbers = #tpu.dot_dimension_numbers<[1], [0], [0], [1], [0, 0, 1, 1], [], []>} : vector<8x32xbf16>, vector<32x32xbf16>, vector<8x32xf32> -> vector<8x32xf32>
    %c1 = arith.constant 1 : index
    %25 = memref.load %arg1[%c1] : memref<3xf32, #tpu.memory_space<smem>>
    %c0_17 = arith.constant 0 : index
    %c0_18 = arith.constant 0 : index
    %26 = vector.load %arg5[%c0_17, %c0_18] : memref<8x16xbf16, #tpu.memory_space<vmem>>, vector<8x16xbf16>
    %c1_19 = arith.constant 1 : index
    %c0_20 = arith.constant 0 : index
    %c0_21 = arith.constant 0 : index
    %27 = vector.load %arg7[%c1_19, %c0_20, %c0_21] : memref<3x16x32xbf16, #tpu.memory_space<vmem>>, vector<1x16x32xbf16>
    %28 = vector.shape_cast %27 : vector<1x16x32xbf16> to vector<16x32xbf16>
    %cst_22 = arith.constant dense<0.000000e+00> : vector<8x32xf32>
    %29 = tpu.matmul %26, %28, %cst_22 {dimension_numbers = #tpu.dot_dimension_numbers<[1], [0], [0], [1], [0, 0, 1, 1], [], []>} : vector<8x16xbf16>, vector<16x32xbf16>, vector<8x32xf32> -> vector<8x32xf32>
    %cst_23 = arith.constant 0.000000e+00 : f32
    %30 = vector.broadcast %cst_23 : f32 to vector<8x32xf32>
    %31 = arith.cmpf oge, %29, %30 : vector<8x32xf32>
    %32 = vector.broadcast %25 : f32 to vector<8x32xf32>
    %33 = arith.mulf %32, %29 : vector<8x32xf32>
    %34 = arith.select %31, %29, %33 : vector<8x32xi1>, vector<8x32xf32>
    %35 = arith.truncf %34 : vector<8x32xf32> to vector<8x32xbf16>
    %c1_24 = arith.constant 1 : index
    %c0_25 = arith.constant 0 : index
    %c0_26 = arith.constant 0 : index
    %36 = vector.load %arg8[%c1_24, %c0_25, %c0_26] : memref<3x32x32xbf16, #tpu.memory_space<vmem>>, vector<1x32x32xbf16>
    %37 = vector.shape_cast %36 : vector<1x32x32xbf16> to vector<32x32xbf16>
    %cst_27 = arith.constant dense<0.000000e+00> : vector<8x32xf32>
    %38 = tpu.matmul %35, %37, %cst_27 {dimension_numbers = #tpu.dot_dimension_numbers<[1], [0], [0], [1], [0, 0, 1, 1], [], []>} : vector<8x32xbf16>, vector<32x32xbf16>, vector<8x32xf32> -> vector<8x32xf32>
    %cst_28 = arith.constant 0.000000e+00 : f32
    %39 = vector.broadcast %cst_28 : f32 to vector<8x32xf32>
    %40 = arith.cmpf oge, %38, %39 : vector<8x32xf32>
    %41 = vector.broadcast %0 : f32 to vector<8x32xf32>
    %42 = arith.mulf %41, %38 : vector<8x32xf32>
    %43 = arith.select %40, %38, %42 : vector<8x32xi1>, vector<8x32xf32>
    %44 = arith.truncf %43 : vector<8x32xf32> to vector<8x32xbf16>
    %c1_29 = arith.constant 1 : index
    %c0_30 = arith.constant 0 : index
    %c0_31 = arith.constant 0 : index
    %45 = vector.load %arg9[%c1_29, %c0_30, %c0_31] : memref<3x32x32xbf16, #tpu.memory_space<vmem>>, vector<1x32x32xbf16>
    %46 = vector.shape_cast %45 : vector<1x32x32xbf16> to vector<32x32xbf16>
    %cst_32 = arith.constant dense<0.000000e+00> : vector<8x32xf32>
    %47 = tpu.matmul %44, %46, %cst_32 {dimension_numbers = #tpu.dot_dimension_numbers<[1], [0], [0], [1], [0, 0, 1, 1], [], []>} : vector<8x32xbf16>, vector<32x32xbf16>, vector<8x32xf32> -> vector<8x32xf32>
    %48 = arith.addf %24, %47 : vector<8x32xf32>
    %c2 = arith.constant 2 : index
    %49 = memref.load %arg1[%c2] : memref<3xf32, #tpu.memory_space<smem>>
    %c0_33 = arith.constant 0 : index
    %c0_34 = arith.constant 0 : index
    %50 = vector.load %arg6[%c0_33, %c0_34] : memref<8x16xbf16, #tpu.memory_space<vmem>>, vector<8x16xbf16>
    %c2_35 = arith.constant 2 : index
    %c0_36 = arith.constant 0 : index
    %c0_37 = arith.constant 0 : index
    %51 = vector.load %arg7[%c2_35, %c0_36, %c0_37] : memref<3x16x32xbf16, #tpu.memory_space<vmem>>, vector<1x16x32xbf16>
    %52 = vector.shape_cast %51 : vector<1x16x32xbf16> to vector<16x32xbf16>
    %cst_38 = arith.constant dense<0.000000e+00> : vector<8x32xf32>
    %53 = tpu.matmul %50, %52, %cst_38 {dimension_numbers = #tpu.dot_dimension_numbers<[1], [0], [0], [1], [0, 0, 1, 1], [], []>} : vector<8x16xbf16>, vector<16x32xbf16>, vector<8x32xf32> -> vector<8x32xf32>
    %cst_39 = arith.constant 0.000000e+00 : f32
    %54 = vector.broadcast %cst_39 : f32 to vector<8x32xf32>
    %55 = arith.cmpf oge, %53, %54 : vector<8x32xf32>
    %56 = vector.broadcast %49 : f32 to vector<8x32xf32>
    %57 = arith.mulf %56, %53 : vector<8x32xf32>
    %58 = arith.select %55, %53, %57 : vector<8x32xi1>, vector<8x32xf32>
    %59 = arith.truncf %58 : vector<8x32xf32> to vector<8x32xbf16>
    %c2_40 = arith.constant 2 : index
    %c0_41 = arith.constant 0 : index
    %c0_42 = arith.constant 0 : index
    %60 = vector.load %arg8[%c2_40, %c0_41, %c0_42] : memref<3x32x32xbf16, #tpu.memory_space<vmem>>, vector<1x32x32xbf16>
    %61 = vector.shape_cast %60 : vector<1x32x32xbf16> to vector<32x32xbf16>
    %cst_43 = arith.constant dense<0.000000e+00> : vector<8x32xf32>
    %62 = tpu.matmul %59, %61, %cst_43 {dimension_numbers = #tpu.dot_dimension_numbers<[1], [0], [0], [1], [0, 0, 1, 1], [], []>} : vector<8x32xbf16>, vector<32x32xbf16>, vector<8x32xf32> -> vector<8x32xf32>
    %cst_44 = arith.constant 0.000000e+00 : f32
    %63 = vector.broadcast %cst_44 : f32 to vector<8x32xf32>
    %64 = arith.cmpf oge, %62, %63 : vector<8x32xf32>
    %65 = vector.broadcast %0 : f32 to vector<8x32xf32>
    %66 = arith.mulf %65, %62 : vector<8x32xf32>
    %67 = arith.select %64, %62, %66 : vector<8x32xi1>, vector<8x32xf32>
    %68 = arith.truncf %67 : vector<8x32xf32> to vector<8x32xbf16>
    %c2_45 = arith.constant 2 : index
    %c0_46 = arith.constant 0 : index
    %c0_47 = arith.constant 0 : index
    %69 = vector.load %arg9[%c2_45, %c0_46, %c0_47] : memref<3x32x32xbf16, #tpu.memory_space<vmem>>, vector<1x32x32xbf16>
    %70 = vector.shape_cast %69 : vector<1x32x32xbf16> to vector<32x32xbf16>
    %cst_48 = arith.constant dense<0.000000e+00> : vector<8x32xf32>
    %71 = tpu.matmul %68, %70, %cst_48 {dimension_numbers = #tpu.dot_dimension_numbers<[1], [0], [0], [1], [0, 0, 1, 1], [], []>} : vector<8x32xbf16>, vector<32x32xbf16>, vector<8x32xf32> -> vector<8x32xf32>
    %72 = arith.addf %48, %71 : vector<8x32xf32>
    %cst_49 = arith.constant 0.000000e+00 : f32
    %73 = vector.broadcast %cst_49 : f32 to vector<8x32xf32>
    %74 = arith.cmpf oge, %72, %73 : vector<8x32xf32>
    %75 = vector.broadcast %1 : f32 to vector<8x32xf32>
    %76 = arith.mulf %75, %72 : vector<8x32xf32>
    %77 = arith.select %74, %72, %76 : vector<8x32xi1>, vector<8x32xf32>
    %78 = arith.truncf %77 : vector<8x32xf32> to vector<8x32xbf16>
    %c0_50 = arith.constant 0 : index
    %c0_51 = arith.constant 0 : index
    %79 = vector.load %arg10[%c0_50, %c0_51] : memref<32x128xbf16, #tpu.memory_space<vmem>>, vector<32x128xbf16>
    %cst_52 = arith.constant dense<0.000000e+00> : vector<8x128xf32>
    %80 = tpu.matmul %78, %79, %cst_52 {dimension_numbers = #tpu.dot_dimension_numbers<[1], [0], [0], [1], [0, 0, 1, 1], [], []>} : vector<8x32xbf16>, vector<32x128xbf16>, vector<8x128xf32> -> vector<8x128xf32>
    %c0_53 = arith.constant 0 : index
    %c0_54 = arith.constant 0 : index
    %81 = vector.load %arg11[%c0_53, %c0_54] : memref<8x128xf32, #tpu.memory_space<vmem>>, vector<8x128xf32>
    tpu.vector_store %arg11[%c0_53, %c0_54], %80 {strides = array<i32>} : memref<8x128xf32, #tpu.memory_space<vmem>>, vector<8x128xf32>,
    return
  }
  func.func @transform_0(%arg0: i32) -> i32 {
    %c0_i32 = arith.constant 0 : i32
    %c0_i32_0 = arith.constant 0 : i32
    return %c0_i32 : i32
  }
  func.func @transform_1(%arg0: i32) -> i32 {
    %c0_i32 = arith.constant 0 : i32
    %c0_i32_0 = arith.constant 0 : i32
    return %c0_i32 : i32
  }
  func.func @transform_2(%arg0: i32) -> i32 {
    %c0_i32 = arith.constant 0 : i32
    %c0_i32_0 = arith.constant 0 : i32
    return %c0_i32 : i32
  }
  func.func @transform_3(%arg0: i32) -> (i32, i32) {
    %c0_i32 = arith.constant 0 : i32
    %c0_i32_0 = arith.constant 0 : i32
    return %arg0, %c0_i32 : i32, i32
  }
  func.func @transform_4(%arg0: i32) -> (i32, i32) {
    %c0_i32 = arith.constant 0 : i32
    %c0_i32_0 = arith.constant 0 : i32
    return %arg0, %c0_i32 : i32, i32
  }
  func.func @transform_5(%arg0: i32) -> (i32, i32) {
    %c0_i32 = arith.constant 0 : i32
    %c0_i32_0 = arith.constant 0 : i32
    return %arg0, %c0_i32 : i32, i32
  }
  func.func @transform_6(%arg0: i32) -> (i32, i32, i32) {
    %c0_i32 = arith.constant 0 : i32
    %c0_i32_0 = arith.constant 0 : i32
    %c0_i32_1 = arith.constant 0 : i32
    %c0_i32_2 = arith.constant 0 : i32
    return %c0_i32, %c0_i32_0, %c0_i32_1 : i32, i32, i32
  }
  func.func @transform_7(%arg0: i32) -> (i32, i32, i32) {
    %c0_i32 = arith.constant 0 : i32
    %c0_i32_0 = arith.constant 0 : i32
    %c0_i32_1 = arith.constant 0 : i32
    %c0_i32_2 = arith.constant 0 : i32
    return %c0_i32, %c0_i32_0, %c0_i32_1 : i32, i32, i32
  }
  func.func @transform_8(%arg0: i32) -> (i32, i32, i32) {
    %c0_i32 = arith.constant 0 : i32
    %c0_i32_0 = arith.constant 0 : i32
    %c0_i32_1 = arith.constant 0 : i32
    %c0_i32_2 = arith.constant 0 : i32
    return %c0_i32, %c0_i32_0, %c0_i32_1 : i32, i32, i32
  }
  func.func @transform_9(%arg0: i32) -> (i32, i32) {
    %c0_i32 = arith.constant 0 : i32
    %c0_i32_0 = arith.constant 0 : i32
    %c0_i32_1 = arith.constant 0 : i32
    return %c0_i32, %c0_i32_0 : i32, i32
  }
  func.func @transform_10(%arg0: i32) -> (i32, i32) {
    %c0_i32 = arith.constant 0 : i32
    %c0_i32_0 = arith.constant 0 : i32
    return %arg0, %c0_i32 : i32, i32
  }
}

</mosaic_0001>

<bundles_post_ra>
// kernel: tpu_custom_call.1
= control target key start
LH: loop header
LB: loop body
LE: loop exit
PB: predicated region body
PF: predicated region fallthrough
CT: control target
= control target key end

     0   :  { %17 = vsyncpa [#allocation7], 0  ;;  %s1198_s0 = inlined_call_operand.vmem [shape: f32[3], index: 0, kind: input, shape index: {}]   ;;  %s1199_s1 = inlined_call_operand.<no memory space> [shape: f32[1], index: 1, kind: input, shape index: {}]   ;;  %s1200_s2 = inlined_call_operand.<no memory space> [shape: f32[1], index: 2, kind: input, shape index: {}]   ;;  %s1201_s3 = inlined_call_operand.vmem [shape: bf16[8,16], index: 3, kind: input, shape index: {}]   ;;  %s1202_s4 = inlined_call_operand.vmem [shape: bf16[8,16], index: 4, kind: input, shape index: {}]   ;;  %s1203_s5 = inlined_call_operand.vmem [shape: bf16[8,16], index: 5, kind: input, shape index: {}]   ;;  %s1204_s6 = inlined_call_operand.hbm [shape: bf16[3,16,32], index: 6, kind: input, shape index: {}]   ;;  %s1205_s7 = inlined_call_operand.hbm [shape: bf16[3,32,32], index: 7, kind: input, shape index: {}]   ;;  %s1206_s8 = inlined_call_operand.hbm [shape: bf16[3,32,32], index: 8, kind: input, shape index: {}]   ;;  %s1207_s9 = inlined_call_operand.vmem [shape: bf16[32,128], index: 9, kind: input, shape index: {}]   ;;  %s1208_s10 = inlined_call_operand.hbm [shape: f32[8,128], index: 10, kind: output, shape index: {}]  }
   0x1   :  { %18 = vsyncpa [#allocation5], 0 }
   0x2   :  { %19 = vsyncpa [#allocation10], 0 }
   0x3   :  { %20 = vsyncpa [#allocation6], 0  ;;  %s27_s15 = sshll.u32 %s1198_s0, 4  ;;  %s999_s16 = smov [#allocation9]   ;;  %s28_s15 = int_to_ptr.vmem [resolvable:$true] %s27_s15 }
   0x4   :  { %s58_s17 = sshll.u32 %s999_s16, 4  ;;  %s891_s20 = scalar_lea.hbm %s1205_s7, 768  ;;  %s59_s17 = int_to_ptr.vmem [resolvable:$true] %s58_s17 }
   0x5   :  { %p892_p0 = scmp.ne.s32.totalorder %s1205_s7, %s891_s20  ;;  %p895_p1 = scmp.lt.u32.totalorder %s891_s20, %s1205_s7 }
   0x7   :  { %p897_p2 = pnand %p895_p1, %p892_p0 }
   0x9   :  { %900 = shalt.err (!%p897_p2)
}
   0xa   :  { %s901_s25 = scalar_lea.vmem %s59_s17, 768  ;;  %p906_p4 = scmp.lt.s32.totalorder %s59_s17, %s59_s17 }
   0xb   :  { %p902_p3 = scmp.ne.s32.totalorder %s59_s17, %s901_s25  ;;  %p907_p5 = scmp.lt.s32.totalorder %s901_s25, %s901_s25 }
   0xd   :  { %p908_p6 = por %p907_p5, %p906_p4 }
   0xf   :  { %p909_p7 = pnand %p908_p6, %p902_p3 }
  0x11   :  { %912 = shalt.err (!%p909_p7)
}
  0x12   :  { %s1000_s0 = smov 64   ;;  %s1001_s26 = smov 4  }
  0x13   :  { %64 = dma.hbm_to_vmem [thread:$0]  %s1205_s7, 768, %s59_s17, [#allocation10], %s1000_s0, %s1000_s0, %s1001_s26  }
  0x14   :  { %s913_s29 = scalar_lea.vmem %s28_s15, 16  ;;  %p918_p9 = scmp.lt.s32.totalorder %s28_s15, %s28_s15 }
  0x15   :  { %p914_p8 = scmp.ne.s32.totalorder %s28_s15, %s913_s29  ;;  %p919_p10 = scmp.lt.s32.totalorder %s913_s29, %s913_s29 }
  0x17   :  { %p920_p11 = por %p919_p10, %p918_p9 }
  0x19   :  { %p921_p12 = pnand %p920_p11, %p914_p8 }
  0x1b   :  { %924 = shalt.err (!%p921_p12)
}
  0x1c   :  { %s1002_s30 = smov [#allocation4]   ;;  %s1003_s11 = smov [#allocation8]  }
  0x1d   :  { %30 = dma.vmem_to_smem %s28_s15, 16, %s1002_s30, [#allocation7]  }
  0x1e   :  { %s46_s12 = sshll.u32 %s1003_s11, 4  ;;  %s1004_s13 = smov [#allocation11]   ;;  %s47_s12 = int_to_ptr.vmem [resolvable:$true] %s46_s12 }
  0x1f   :  { %s70_s14 = sshll.u32 %s1004_s13, 4  ;;  %s925_s7 = scalar_lea.hbm %s1204_s6, 384  ;;  %s1081_s14 = int_to_ptr.vmem [resolvable:$true] %s70_s14 }
  0x20   :  { %p926_p13 = scmp.ne.s32.totalorder %s1204_s6, %s925_s7  ;;  %p929_p0 = scmp.lt.u32.totalorder %s925_s7, %s1204_s6 }
  0x22   :  { %p931_p1 = pnand %p929_p0, %p926_p13 }
  0x24   :  { %934 = shalt.err (!%p931_p1)
}
  0x25   :  { %s935_s15 = scalar_lea.vmem %s47_s12, 384  ;;  %p940_p3 = scmp.lt.s32.totalorder %s47_s12, %s47_s12 }
  0x26   :  { %p936_p2 = scmp.ne.s32.totalorder %s47_s12, %s935_s15  ;;  %p941_p4 = scmp.lt.s32.totalorder %s935_s15, %s935_s15 }
  0x28   :  { %p942_p5 = por %p941_p4, %p940_p3 }
  0x2a   :  { %p943_p6 = pnand %p942_p5, %p936_p2 }
  0x2c   :  { %946 = shalt.err (!%p943_p6)
}
  0x2d   :  { %52 = dma.hbm_to_vmem [thread:$0]  %s1204_s6, 384, %s47_s12, [#allocation5], %s1000_s0, %s1000_s0, %s1001_s26  }
  0x2e   :  { %s947_s27 = scalar_lea.hbm %s1206_s8, 768 }
  0x2f   :  { %p948_p7 = scmp.ne.s32.totalorder %s1206_s8, %s947_s27  ;;  %p951_p8 = scmp.lt.u32.totalorder %s947_s27, %s1206_s8 }
  0x31   :  { %p953_p9 = pnand %p951_p8, %p948_p7 }
  0x33   :  { %956 = shalt.err (!%p953_p9)
}
  0x34   :  { %s957_s13 = scalar_lea.vmem %s1081_s14, 768  ;;  %p962_p11 = scmp.lt.s32.totalorder %s1081_s14, %s1081_s14 }
  0x35   :  { %p958_p10 = scmp.ne.s32.totalorder %s1081_s14, %s957_s13  ;;  %p963_p12 = scmp.lt.s32.totalorder %s957_s13, %s957_s13 }
  0x37   :  { %p964_p13 = por %p963_p12, %p962_p11 }
  0x39   :  { %p965_p0 = pnand %p964_p13, %p958_p10 }
  0x3b   :  { %968 = shalt.err (!%p965_p0)
}
  0x3c   :  { %76 = dma.hbm_to_vmem [thread:$0]  %s1206_s8, 768, %s1081_s14, [#allocation10], %s1000_s0, %s1000_s0, %s1001_s26  }
  0x3d   :  { %991 = dma.done.wait [#allocation7], 16  }
  0x3e   :  { %992 = vsyncadd [#allocation7], 4294967280 }
  0x3f   :  { %993 = dma.done.wait [#allocation5], 384  }
  0x40   :  { %994 = vsyncadd [#allocation5], 4294966912 }
  0x41   :  { %995 = dma.done.wait [#allocation10], 1536  }
  0x42   :  { %996 = vsyncadd [#allocation10], 4294965760 }
  0x43   :  { %91 = sfence }
  0x44   :  { %v874_v0 = vld [vmem:[#allocation8] sm:$0xff]   ;;  %v1005_v1 = vmov 0.0   ;;  %vm1006_vm0 = vmmov 0   ;;  %vm105_vm1 = vcmask 130048   ;;  %v875_v3 = vld [vmem:[#allocation8 + $0x8] sm:$0xff]   ;;  %v876_v4 = vld [vmem:[#allocation9] sm:$0xff]   ;;  %v215_v35 = vstv %s1200_s2 }
  0x45   :  { %783 = vmatprep.subr.bf16.mxu0 %v1005_v1  ;;  %789 = vmatprep.subr.bf16.mxu1 %v1005_v1  ;;  %v96_v2 = vld [vmem:[%s1201_s3] sm:$0xf]  ;;  %s95_s26 = sld [smem:[#allocation4]]  ;;  %s732_s14 = sld [smem:[#allocation4 + $0x1]]  ;;  %vm170_vm3 = vcmask 261120   ;;  %v878_v14 = vld [vmem:[#allocation9 + $0x10] sm:$0xff]  }
  0x46   :  { %784 = vmatpush3.bf16.msra.mxu0 %v874_v0  ;;  %785 = vmatprep.mubr.msk.bf16.mxu0 %vm1006_vm0, %v1005_v1  ;;  %v224_v5 = vld [vmem:[%s1202_s4] sm:$0xf]  ;;  %v879_v17 = vld [vmem:[#allocation9 + $0x18] sm:$0xff]   ;;  %v881_v27 = vld [vmem:[#allocation11 + $0x10] sm:$0xff]   ;;  %s1007_s23 = smov [#allocation12]  }
  0x47   :  { %797 = vmatprep.subr.bf16.mxu0 %v1005_v1  ;;  %793 = vmatprep.mubr.msk.bf16.mxu1 %vm1006_vm0, %v1005_v1  ;;  %v877_v6 = vld [vmem:[#allocation9 + $0x8] sm:$0xff]   ;;  %v880_v24 = vld [vmem:[#allocation8 + $0x10] sm:$0xff]   ;;  %v883_v29 = vld [vmem:[#allocation9 + $0x20] sm:$0xff]   ;;  %s716_s24 = sshll.u32 %s1007_s23, 4  ;;  %s717_s24 = int_to_ptr.vmem [resolvable:$true] %s716_s24 }
  0x48   :  { %790 = vmatpush3.bf16.msra.mxu1 %v876_v4  ;;  %v462_v26 = vld [vmem:[%s1203_s5] sm:$0xf]  ;;  %s744_s5 = sld [smem:[#allocation4 + $0x2]]  ;;  %v884_v42 = vld [vmem:[#allocation11] sm:$0xff]   ;;  %v886_v45 = vld [vmem:[#allocation11 + $0x8] sm:$0xff]   ;;  %v646_v4 = vstv %s1199_s1  ;;  %p974_p2 = scmp.lt.s32.totalorder %s717_s24, %s717_s24 }
  0x49   :  { %786 = vmatmul.mubr.msk.bf16.vlgmr.msra.gmra.mrb[0].mxu0 %vm105_vm1, %v96_v2  ;;  %791 = vmatprep.subr.bf16.mxu1 %v1005_v1  ;;  %v882_v28 = vld [vmem:[#allocation11 + $0x18] sm:$0xff]   ;;  %v887_v55 = vld [vmem:[#allocation11 + $0x20] sm:$0xff]   ;;  %v888_v57 = vld [vmem:[#allocation11 + $0x28] sm:$0xff]  }
  0x4a   :  { %798 = vmatpush3.bf16.msra.mxu0 %v875_v3  ;;  %799 = vmatprep.mubr.msk.bf16.mxu0 %vm1006_vm0, %v1005_v1  ;;  %v885_v30 = vld [vmem:[#allocation9 + $0x28] sm:$0xff]   ;;  %v890_v3 = vld [vmem:[%s1207_s9 + $0x8] sm:$0xff]  }
  0x4b   :  { %811 = vmatprep.subr.bf16.mxu0 %v1005_v1  ;;  %v150_v7 = vstv %s95_s26  ;;  %v278_v16 = vstv %s732_s14  ;;  %v889_v58 = vld [vmem:[%s1207_s9] sm:$0xff]   ;;  %s969_s9 = scalar_lea.vmem %s717_s24, 128 }
  0x4c   :  { %792 = vmatpush3.bf16.msra.mxu1 %v877_v6  ;;  %p970_p1 = scmp.ne.s32.totalorder %s717_s24, %s969_s9  ;;  %p975_p3 = scmp.lt.s32.totalorder %s969_s9, %s969_s9 }
  0x4d   :  { %803 = vmatprep.subr.bf16.mxu1 %v1005_v1 }
  0x4e   :  { %v516_v44 = vstv %s744_s5  ;;  %p976_p4 = por %p975_p3, %p974_p2 }
  0x50   :  { %p977_p5 = pnand %p976_p4, %p970_p1 }
  0x51   :  { %800 = vmatmul.mubr.msk.bf16.vlgmr.msra.gmra.mrb[4].mxu0 %vm105_vm1, %v224_v5 }
  0x52   :  { %815 = vmatprep.mubr.msk.bf16.mxu0 %vm1006_vm0, %v1005_v1  ;;  %812 = vmatpush3.bf16.msra.mxu0 %v881_v27 }
  0x53   :  { %813 = vmatprep.subr.bf16.mxu0 %v1005_v1 }
  0x56   :  { %814 = vmatpush3.bf16.msra.mxu0 %v882_v28 }
  0x57   :  { %819 = vmatprep.subr.bf16.mxu0 %v1005_v1 }
 0x11c   :  { %v143_v8 = vpop.f32.mrb[0].mxu0 }
 0x11d   :  { %vm149_vm2 = vcmp.ge.f32.partialorder %v143_v8, 0.0  ;;  %v151_v9 = vmul.f32 %v150_v7, %v143_v8  ;;  %v787_v10 = vpop.f32.mrb[1].mxu0 }
 0x11e   :  { %v146_v11 = vpop.f32.mrb[2].mxu0 }
 0x11f   :  { %v152_v12 = vsel %vm149_vm2, %v143_v8, %v151_v9  ;;  %v788_v13 = vpop.f32.mrb[3].mxu0 }
 0x120   :  { %v153_v15 = vpack.c.bf16 %v152_v12, %v152_v12 }
 0x122   :  { %794 = vmatmul.mubr.msk.bf16.vlgmr.msra.gmra.mrb[0].mxu1 %vm170_vm3, %v153_v15 }
 0x123   :  { %804 = vmatpush3.bf16.msra.mxu1 %v878_v14  ;;  %807 = vmatprep.mubr.msk.bf16.mxu1 %vm1006_vm0, %v1005_v1 }
 0x124   :  { %v271_v18 = vpop.f32.mrb[4].mxu0  ;;  %805 = vmatprep.subr.bf16.mxu1 %v1005_v1 }
 0x125   :  { %vm277_vm4 = vcmp.ge.f32.partialorder %v271_v18, 0.0  ;;  %v279_v19 = vmul.f32 %v278_v16, %v271_v18  ;;  %v801_v20 = vpop.f32.mrb[5].mxu0 }
 0x126   :  { %v274_v21 = vpop.f32.mrb[6].mxu0 }
 0x127   :  { %v280_v22 = vsel %vm277_vm4, %v271_v18, %v279_v19  ;;  %v802_v23 = vpop.f32.mrb[7].mxu0  ;;  %806 = vmatpush3.bf16.msra.mxu1 %v879_v17 }
 0x128   :  { %v281_v25 = vpack.c.bf16 %v280_v22, %v280_v22  ;;  %827 = vmatprep.subr.bf16.mxu1 %v1005_v1 }
 0x12a   :  { %808 = vmatmul.mubr.msk.bf16.vlgmr.msra.gmra.mrb[4].mxu1 %vm170_vm3, %v281_v25 }
 0x12b   :  { %828 = vmatpush3.bf16.msra.mxu1 %v880_v24  ;;  %829 = vmatprep.mubr.msk.bf16.mxu1 %vm1006_vm0, %v1005_v1 }
 0x12c   :  { %833 = vmatprep.subr.bf16.mxu1 %v1005_v1 }
 0x132   :  { %830 = vmatmul.mubr.msk.bf16.vlgmr.msra.gmra.mrb[8].mxu1 %vm105_vm1, %v462_v26 }
 0x133   :  { %837 = vmatprep.mubr.msk.bf16.mxu1 %vm1006_vm0, %v1005_v1  ;;  %834 = vmatpush3.bf16.msra.mxu1 %v883_v29 }
 0x134   :  { %835 = vmatprep.subr.bf16.mxu1 %v1005_v1 }
 0x137   :  { %836 = vmatpush3.bf16.msra.mxu1 %v885_v30 }
 0x138   :  { %849 = vmatprep.subr.bf16.mxu1 %v1005_v1 }
 0x1f5   :  { %v208_v31 = vpop.f32.mrb[0].mxu1 }
 0x1f6   :  { %v795_v32 = vpop.f32.mrb[1].mxu1  ;;  %v216_v47 = vmul.f32 %v215_v35, %v208_v31  ;;  %vm214_vm7 = vcmp.ge.f32.partialorder %v208_v31, 0.0 }
 0x1f7   :  { %v211_v33 = vpop.f32.mrb[2].mxu1 }
 0x1f8   :  { %v796_v34 = vpop.f32.mrb[3].mxu1  ;;  %v217_v54 = vsel %vm214_vm7, %v208_v31, %v216_v47 }
 0x1f9   :  { %v218_v56 = vpack.c.bf16 %v217_v54, %v217_v54 }
 0x1fd   :  { %v336_v36 = vpop.f32.mrb[4].mxu1 }
 0x1fe   :  { %vm342_vm5 = vcmp.ge.f32.partialorder %v336_v36, 0.0  ;;  %v343_v37 = vmul.f32 %v336_v36, %v215_v35  ;;  %v809_v38 = vpop.f32.mrb[5].mxu1 }
 0x1ff   :  { %v339_v39 = vpop.f32.mrb[6].mxu1 }
 0x200   :  { %v344_v40 = vsel %vm342_vm5, %v336_v36, %v343_v37  ;;  %v810_v41 = vpop.f32.mrb[7].mxu1 }
 0x201   :  { %v345_v43 = vpack.c.bf16 %v344_v40, %v344_v40 }
 0x203   :  { %816 = vmatmul.mubr.msk.bf16.vlgmr.msra.gmra.mrb[8].mxu0 %vm170_vm3, %v345_v43 }
 0x204   :  { %820 = vmatpush3.bf16.msra.mxu0 %v884_v42  ;;  %823 = vmatprep.mubr.msk.bf16.mxu0 %vm1006_vm0, %v1005_v1 }
 0x205   :  { %v509_v46 = vpop.f32.mrb[8].mxu1  ;;  %821 = vmatprep.subr.bf16.mxu0 %v1005_v1 }
 0x206   :  { %vm515_vm6 = vcmp.ge.f32.partialorder %v509_v46, 0.0  ;;  %v517_v48 = vmul.f32 %v516_v44, %v509_v46  ;;  %v831_v49 = vpop.f32.mrb[9].mxu1 }
 0x207   :  { %v512_v50 = vpop.f32.mrb[10].mxu1 }
 0x208   :  { %v518_v51 = vsel %vm515_vm6, %v509_v46, %v517_v48  ;;  %v832_v52 = vpop.f32.mrb[11].mxu1  ;;  %822 = vmatpush3.bf16.msra.mxu0 %v886_v45 }
 0x209   :  { %v519_v53 = vpack.c.bf16 %v518_v51, %v518_v51  ;;  %841 = vmatprep.subr.bf16.mxu0 %v1005_v1 }
 0x20b   :  { %838 = vmatmul.mubr.msk.bf16.vlgmr.msra.gmra.mrb[12].mxu1 %vm170_vm3, %v519_v53 }
 0x20c   :  { %853 = vmatprep.mubr.msk.bf16.mxu1 %vm1006_vm0, %v1005_v1  ;;  %850 = vmatpush3.bf16.msra.mxu1 %v889_v58 }
 0x20d   :  { %851 = vmatprep.subr.bf16.mxu1 %v1005_v1 }
 0x20f   :  { %824 = vmatmul.mubr.msk.bf16.vlgmr.msra.gmra.mrb[8].mxu0 %vm170_vm3, %v218_v56 }
 0x210   :  { %842 = vmatpush3.bf16.msra.mxu0 %v887_v55  ;;  %845 = vmatprep.mubr.msk.bf16.mxu0 %vm1006_vm0, %v1005_v1 }
 0x211   :  { %843 = vmatprep.subr.bf16.mxu0 %v1005_v1  ;;  %852 = vmatpush3.bf16.msra.mxu1 %v890_v3 }
 0x214   :  { %844 = vmatpush3.bf16.msra.mxu0 %v888_v57 }
 0x2de   :  { %v574_v59 = vpop.f32.mrb[12].mxu1 }
 0x2df   :  { %vm580_vm8 = vcmp.ge.f32.partialorder %v574_v59, 0.0  ;;  %v581_v60 = vmul.f32 %v574_v59, %v215_v35  ;;  %v839_v61 = vpop.f32.mrb[13].mxu1 }
 0x2e0   :  { %v577_v62 = vpop.f32.mrb[14].mxu1 }
 0x2e1   :  { %v582_v63 = vsel %vm580_vm8, %v574_v59, %v581_v60  ;;  %v840_v0 = vpop.f32.mrb[15].mxu1 }
 0x2e2   :  { %v583_v2 = vpack.c.bf16 %v582_v63, %v582_v63 }
 0x2e4   :  { %846 = vmatmul.mubr.msk.bf16.vlgmr.msra.gmra.mrb[8].mxu0 %vm170_vm3, %v583_v2 }
 0x3b7   :  { %v638_v1 = vpop.f32.mrb[8].mxu0 }
 0x3b8   :  { %vm645_vm9 = vcmp.ge.f32.partialorder %v638_v1, 0.0  ;;  %v647_v5 = vmul.f32 %v646_v4, %v638_v1  ;;  %v847_v6 = vpop.f32.mrb[9].mxu0 }
 0x3b9   :  { %v641_v7 = vpop.f32.mrb[10].mxu0 }
 0x3ba   :  { %v648_v8 = vsel %vm645_vm9, %v638_v1, %v647_v5  ;;  %v848_v9 = vpop.f32.mrb[11].mxu0 }
 0x3bb   :  { %v649_v10 = vpack.c.bf16 %v648_v8, %v648_v8 }
 0x3bd   :  { %854 = vmatmul.mubr.msk.bf16.vlgmr.msra.gmra.mrb[16].mxu1 %vm170_vm3, %v649_v10 }
 0x490   :  { %v703_v11 = vpop.f32.mrb[16].mxu1 }
 0x491   :  { %709 = vst [vmem:[#allocation12] sm:$0xff] %v703_v11  ;;  %v855_v12 = vpop.f32.mrb[17].mxu1 }
 0x492   :  { %v706_v13 = vpop.f32.mrb[18].mxu1 }
 0x493   :  { %980 = shalt.err (!%p977_p5)
}
 0x494   :  { %s981_s27 = scalar_lea.hbm %s1208_s10, 128 }
 0x495   :  { %p982_p6 = scmp.ne.s32.totalorder %s1208_s10, %s981_s27  ;;  %p985_p7 = scmp.lt.u32.totalorder %s981_s27, %s1208_s10 }
 0x497   :  { %p987_p8 = pnand %p985_p7, %p982_p6 }
 0x499   :  { %990 = shalt.err (!%p987_p8)
}
 0x49a   :  { %719 = dma.vmem_to_hbm [thread:$0]  %s717_s24, 128, %s1208_s10, [#allocation6]   ;;  %v856_v14 = vpop.f32.mrb[19].mxu1 }
 0x49b   :  { %997 = dma.done.wait [#allocation6], 128  }
 0x49c   :  { %998 = vsyncadd [#allocation6], 4294967168 }
 0x49d   :  { %723 = vsyncpa [#allocation5], 1 }
 0x49e   :  { %724 = vsyncpa [#allocation10], 1 }
 0x49f   :  { %725 = vsyncpa [#allocation6], 1 }
 0x4a0   :  { %726 = vsyncpa [#allocation7], 1 }

</bundles_post_ra>
